<compile_context>
chip_gen: v6e
topology: v6e:2x2x1
jax: 0.10.0
libtpu: 0.0.40
codegen_flags: <defaults>
</compile_context>

<pallas_src>
import functools

import jax
import jax.numpy as jnp
from jax.experimental import pallas as pl
from jax.experimental.pallas import tpu as pltpu


# Accumulator rows inside each (8, TILE_N) output block:
#   row 0                 : count of valid (CE) rays            (shared by both types)
#   rows 1+3t, 2+3t, 3+3t : ce_sum, inv2b2_sum, logbeta_sum for type t (t=0 coarse, t=1 fine)
def _fused_loss_kernel(ignore_index, beta_min, n_true, n_types, *refs):
    targets_ref, mask_ref, beta_ref = refs[0], refs[1], refs[2]
    lw_refs = refs[3:3 + 2 * n_types]
    out_ref = refs[3 + 2 * n_types]

    tile_n = out_ref.shape[1]
    p = pl.program_id(0)               # partial (TensorCore) axis -- "parallel"
    j = pl.program_id(1)               # reduction axis over ray tiles -- "arbitrary"
    num_partials = pl.num_programs(0)

    @pl.when(j == 0)
    def _init():
        out_ref[...] = jnp.zeros_like(out_ref)

    tgt = targets_ref[...]             # (1, T) int32
    msk = mask_ref[...]                # (1, T) int32 (0/1)

    # Global ray index of each lane (tiles are interleaved over partials).
    col = jax.lax.broadcasted_iota(jnp.int32, (1, tile_n), 1)
    gidx = (j * num_partials + p) * tile_n + col
    in_range = gidx < n_true           # lanes past N may hold garbage -> masked below
    valid = jnp.logical_and(jnp.logical_and(tgt != ignore_index, msk != 0), in_range)
    validf = valid.astype(jnp.float32)

    # Native (T,S)/(T,C) tiles -> lane-dense (S/C, T) orientation on the XLU
    # (idle in this kernel), then reduce over sublanes.
    beta_in = jnp.transpose(beta_ref[...].astype(jnp.float32))          # (S, T)

    c = lw_refs[0].shape[1]
    cls = jax.lax.broadcasted_iota(jnp.int32, (c, tile_n), 0)           # hoisted
    zero_row = jnp.zeros((1, tile_n), jnp.float32)

    rows = [validf]                    # row 0: shared valid-ray count
    for t in range(n_types):
        logits = jnp.transpose(lw_refs[2 * t][...].astype(jnp.float32))       # (C, T)
        weights = jnp.transpose(lw_refs[2 * t + 1][...].astype(jnp.float32))  # (S, T)

        # Per-ray softmax cross entropy: ce = logsumexp(x) - x[target].
        row_max = jnp.max(logits, axis=0, keepdims=True)                      # (1, T)
        shifted = logits - row_max
        lse = jnp.log(jnp.sum(jnp.exp(shifted), axis=0, keepdims=True))       # (1, T)
        tgt_logit = jnp.sum(jnp.where(cls == tgt, shifted, 0.0),
                            axis=0, keepdims=True)                            # (1, T)
        ce = lse - tgt_logit                                                  # (1, T)

        # beta = sum_s w[s] * beta_in[s] + beta_min
        beta = jnp.sum(weights * beta_in, axis=0, keepdims=True) + beta_min   # (1, T)
        inv2b2 = pl.reciprocal(2.0 * beta * beta, approx=False)               # 1/(2 beta^2)
        logb = jnp.log(beta)

        # Mask AFTER the math: NaN/Inf produced by garbage lanes is discarded
        # by jnp.where before anything reaches the accumulators.
        rows.append(jnp.where(valid, ce, 0.0))
        rows.append(jnp.where(in_range, inv2b2, 0.0))
        rows.append(jnp.where(in_range, logb, 0.0))

    while len(rows) < 8:
        rows.append(zero_row)

    # Single unmasked full-block RMW instead of seven sublane-masked row stores.
    out_ref[...] += jnp.concatenate(rows, axis=0)


def _round_up(x, m):
    return ((x + m - 1) // m) * m


def _pad_lanes(x, n_pad):
    n = x.shape[-1]
    if n == n_pad:
        return x
    pads = [(0, 0)] * (x.ndim - 1) + [(0, n_pad - n)]
    return jnp.pad(x, pads)


def _chip_profile():
    kind = ""
    try:
        kind = jax.devices()[0].device_kind.lower()
    except Exception:
        pass
    if "v7" in kind:                   # 2 TCs/chip, 64 MiB VMEM per TC
        return dict(two_tc=True, cap=4096, budget=8 << 20, vmem_limit=32 << 20)
    if "v5p" in kind or "v4" in kind:  # 2 TCs/chip, 128 MiB VMEM
        return dict(two_tc=True, cap=8192, budget=24 << 20, vmem_limit=64 << 20)
    if "v5" in kind or "v6" in kind:   # v5e / v6e: single TC, 128 MiB VMEM
        return dict(two_tc=False, cap=8192, budget=24 << 20, vmem_limit=64 << 20)
    return dict(two_tc=False, cap=4096, budget=8 << 20, vmem_limit=32 << 20)


def _run_fused_kernel(targets_row, mask_row, beta_nt, logits_weights, *,
                      ignore_index, beta_min, n_true, max_tile_n=None):
    n_types = len(logits_weights) // 2
    c = logits_weights[0].shape[1]
    s = beta_nt.shape[1]

    prof = _chip_profile()
    cap = prof["cap"] if max_tile_n is None else min(prof["cap"], max_tile_n)

    def pad128(x):
        return _round_up(x, 128)

    # VMEM bytes per ray: double-buffered streamed blocks (narrow minor dims are
    # lane-padded in VMEM), the tiny int rows, the in-kernel f32 temporaries and
    # the resident output block.
    in_item = jnp.dtype(logits_weights[0].dtype).itemsize
    beta_item = jnp.dtype(beta_nt.dtype).itemsize
    per_ray = (2 * (n_types * (pad128(c) + pad128(s)) * in_item + pad128(s) * beta_item)
               + 2 * 2 * 8 * 4
               + n_types * (pad128(c) + 4 * c) * 4 + 8 * s * 4
               + 2 * 8 * 4)
    tile_n = (prof["budget"] // max(per_ray, 1)) // 128 * 128
    tile_n = max(128, min(cap, tile_n))
    tile_n = min(tile_n, _round_up(n_true, 128))

    num_tiles = pl.cdiv(n_true, tile_n)
    num_partials = 2 if (prof["two_tc"] and num_tiles >= 2) else 1
    steps = pl.cdiv(num_tiles, num_partials)
    last_tile = num_tiles - 1

    # Only the tiny (1, N) int32 rows are padded (so every grid block reads
    # in-bounds data); the big tensors stay unpadded -- no extra HBM copies.
    n_cover = num_partials * steps * tile_n
    targets_row = _pad_lanes(targets_row, n_cover)
    mask_row = _pad_lanes(mask_row, n_cover)

    def row_map(p, j):
        return (0, j * num_partials + p)

    def mat_map(p, j):
        # Clamp fully out-of-range tiles onto the last real tile; their
        # contribution is masked to zero inside the kernel (in_range is derived
        # from the *unclamped* program ids).
        return (jnp.minimum(j * num_partials + p, last_tile), 0)

    in_specs = [pl.BlockSpec((1, tile_n), row_map),        # targets
                pl.BlockSpec((1, tile_n), row_map),        # ignore mask
                pl.BlockSpec((tile_n, s), mat_map)]        # beta input (coarse), native layout
    for _ in range(n_types):
        in_specs.append(pl.BlockSpec((tile_n, c), mat_map))   # logits_{typ}, native layout
        in_specs.append(pl.BlockSpec((tile_n, s), mat_map))   # weights_{typ}, native layout

    kern = functools.partial(_fused_loss_kernel, int(ignore_index),
                             float(beta_min), int(n_true), n_types)

    out = pl.pallas_call(
        kern,
        out_shape=jax.ShapeDtypeStruct((num_partials * 8, tile_n), jnp.float32),
        grid=(num_partials, steps),
        in_specs=in_specs,
        out_specs=pl.BlockSpec((8, tile_n), lambda p, j: (p, 0)),
        compiler_params=pltpu.CompilerParams(
            dimension_semantics=("parallel", "arbitrary"),
            vmem_limit_bytes=prof["vmem_limit"]),
    )(targets_row, mask_row, beta_nt, *logits_weights)

    # Final tiny reduction (num_partials x 8 x TILE_N -> 8 scalars) in plain JAX.
    return jnp.sum(out.reshape(num_partials, 8, tile_n), axis=(0, 2))


def semantic_uncertainty_losses_pallas(inputs, targets, ignore_mask, ignore_index,
                                       beta_min=0.05, detach_gradient=False,
                                       max_tile_n=None):
    # beta input is always the *coarse* beta, matching the PyTorch reference.
    beta_input = inputs.get('beta_semantic_coarse', inputs.get('beta_coarse'))
    if detach_gradient:
        beta_input = jax.lax.stop_gradient(beta_input)

    targets = jnp.reshape(jnp.squeeze(targets), (-1,))
    n = targets.shape[0]
    s = beta_input.shape[1]

    typs = ['coarse'] + (['fine'] if 'semantic_logits_fine' in inputs else [])

    # Tiny rows only -- the big tensors go to the kernel in native layout
    # (no wrapper-side transposes / pads, i.e. no extra HBM passes).
    targets_row = jnp.reshape(targets, (1, n)).astype(jnp.int32)
    mask_row = jnp.reshape(ignore_mask, (1, n)).astype(jnp.int32)
    beta_nt = jnp.reshape(beta_input, (n, s))             # (N, S), free reshape of (N,S,1)

    logits_weights = []
    for typ in typs:
        logits_weights.append(inputs[f'semantic_logits_{typ}'])   # (N, C) native
        logits_weights.append(inputs[f'weights_{typ}'])           # (N, S) native
    assert all(lw.shape[1] == logits_weights[0].shape[1] for lw in logits_weights[0::2])

    sums = _run_fused_kernel(targets_row, mask_row, beta_nt, logits_weights,
                             ignore_index=ignore_index, beta_min=beta_min,
                             n_true=n, max_tile_n=max_tile_n)

    cnt = jnp.maximum(sums[0], 1.0)   # guard: reference would NaN when no ray is valid
    loss_dict = {}
    for t, typ in enumerate(typs):
        ce_mean = sums[1 + 3 * t] / cnt                              # CrossEntropy 'mean'
        loss_dict[f'{typ}_semantic'] = ce_mean * (sums[2 + 3 * t] / n)
        if 'beta_semantic_coarse' in inputs:
            loss_dict[f'{typ}_semantic_logbeta'] = (3.0 + sums[3 + 3 * t] / n) / 2.0
    return loss_dict


class SemanticUncertaintyLossPallas:
    """JAX/Pallas port of SemanticUncertaintyLoss.forward (coarse+fine fused in one kernel)."""

    def __init__(self, lambda_s, car_index, detach_beta_for_s=False,
                 ignore_car_index=False, max_tile_n=None):
        self.lambda_s = lambda_s
        if not ignore_car_index:
            car_index = -100
        self.ignore_index = car_index
        self.detach_beta_for_s = detach_beta_for_s   # forward value unaffected
        self.max_tile_n = max_tile_n

    def __call__(self, inputs, targets, ignore_mask=None):
        targets = jnp.squeeze(targets)
        n = targets.shape[0]
        if ignore_mask is None:
            ignore_mask = jnp.ones((n,), dtype=jnp.bool_)
        loss_dict = semantic_uncertainty_losses_pallas(
            inputs, targets, ignore_mask, self.ignore_index,
            detach_gradient=self.detach_beta_for_s, max_tile_n=self.max_tile_n)
        loss_dict = {k: v * self.lambda_s for k, v in loss_dict.items()}
        loss = sum(loss_dict.values())
        return loss, loss_dict


# ----------------------------- pure-JAX reference -----------------------------
def _ref_loss(inputs, targets, ignore_mask, lambda_s, ignore_index, beta_min=0.05):
    targets = jnp.squeeze(targets)
    beta_input = inputs.get('beta_semantic_coarse', inputs.get('beta_coarse'))
    loss_dict = {}
    for typ in ('coarse', 'fine'):
        if f'semantic_logits_{typ}' not in inputs:
            continue
        beta = jnp.sum(inputs[f'weights_{typ}'][..., None] * beta_input, -2) + beta_min  # (N,1)
        logits = inputs[f'semantic_logits_{typ}']
        lse = jax.scipy.special.logsumexp(logits, axis=-1)
        tl = jnp.take_along_axis(logits, targets[:, None], axis=-1)[:, 0]
        ce = lse - tl
        valid = jnp.logical_and(ignore_mask, targets != ignore_index)
        loss_term = jnp.sum(jnp.where(valid, ce, 0.0)) / jnp.sum(valid)
        loss_dict[f'{typ}_semantic'] = jnp.mean(loss_term / (2.0 * beta ** 2))
        if 'beta_semantic_coarse' in inputs:
            loss_dict[f'{typ}_semantic_logbeta'] = (3.0 + jnp.mean(jnp.log(beta))) / 2.0
    loss_dict = {k: v * lambda_s for k, v in loss_dict.items()}
    return sum(loss_dict.values()), loss_dict


def _make_inputs(key, n, s, c):
    ks = jax.random.split(key, 8)
    inputs = {
        'semantic_logits_coarse': jax.random.normal(ks[0], (n, c), jnp.float32),
        'semantic_logits_fine':   jax.random.normal(ks[1], (n, c), jnp.float32),
        'weights_coarse': jax.nn.softmax(jax.random.normal(ks[2], (n, s), jnp.float32), axis=-1),
        'weights_fine':   jax.nn.softmax(jax.random.normal(ks[3], (n, s), jnp.float32), axis=-1),
        'beta_semantic_coarse': jax.nn.softplus(jax.random.normal(ks[4], (n, s, 1), jnp.float32)),
    }
    targets = jax.random.randint(ks[5], (n, 1), 0, c, dtype=jnp.int32)
    ignore_mask = jax.random.uniform(ks[6], (n,)) > 0.1
    return inputs, targets, ignore_mask


def _check(loss, loss_dict, ref_loss, ref_dict):
    assert set(loss_dict.keys()) == set(ref_dict.keys())
    for k in loss_dict:
        assert jnp.allclose(loss_dict[k], ref_dict[k], rtol=1e-4, atol=1e-6), (
            k, loss_dict[k], ref_dict[k])
    assert jnp.allclose(loss, ref_loss, rtol=1e-4, atol=1e-6)


if __name__ == "__main__":
    key = jax.random.PRNGKey(0)
    k1, k2 = jax.random.split(key)

    # Config 1: multi-tile path with a ragged tail (forced small tile).  Exercises
    # interleaved partials / clamped index maps / in-kernel tail masking.
    N, S, C = 300, 8, 32
    inputs, targets, ignore_mask = _make_inputs(k1, N, S, C)
    loss_mod = SemanticUncertaintyLossPallas(lambda_s=1.0, car_index=3,
                                             detach_beta_for_s=False,
                                             ignore_car_index=True, max_tile_n=128)
    loss, loss_dict = loss_mod(inputs, targets, ignore_mask)
    loss = jax.block_until_ready(loss)
    ref_loss, ref_dict = _ref_loss(inputs, targets, ignore_mask, lambda_s=1.0, ignore_index=3)
    _check(loss, loss_dict, ref_loss, ref_dict)

    # Config 2: single-tile path (chip-default tile sizing), default ignore mask.
    N2 = 128
    inputs2, targets2, _ = _make_inputs(k2, N2, S, C)
    loss_mod2 = SemanticUncertaintyLossPallas(lambda_s=0.5, car_index=3,
                                              detach_beta_for_s=True,
                                              ignore_car_index=False)
    loss2, loss_dict2 = loss_mod2(inputs2, targets2, None)
    loss2 = jax.block_until_ready(loss2)
    ref_loss2, ref_dict2 = _ref_loss(inputs2, targets2, jnp.ones((N2,), jnp.bool_),
                                     lambda_s=0.5, ignore_index=-100)
    _check(loss2, loss_dict2, ref_loss2, ref_dict2)

    print("KERNEL_OK")
</pallas_src>

<mosaic_0001>
module attributes {stable_mosaic.version = 11 : i64} {
  func.func @_fused_loss_kernel(%arg0: i32, %arg1: i32, %arg2: memref<1x128xi32, #tpu.memory_space<vmem>>, %arg3: memref<1x128xi32, #tpu.memory_space<vmem>>, %arg4: memref<128x8xf32, #tpu.memory_space<vmem>>, %arg5: memref<128x32xf32, #tpu.memory_space<vmem>>, %arg6: memref<128x8xf32, #tpu.memory_space<vmem>>, %arg7: memref<128x32xf32, #tpu.memory_space<vmem>>, %arg8: memref<128x8xf32, #tpu.memory_space<vmem>>, %arg9: memref<8x128xf32, #tpu.memory_space<vmem>>) attributes {dimension_semantics = [#tpu.dimension_semantics<parallel>, #tpu.dimension_semantics<arbitrary>], iteration_bounds = array<i64: 1, 3>, scalar_prefetch = 0 : i64, scratch_operands = 0 : i64, tpu.core_type = #tpu.core_type<tc>, window_params = [{transform_indices = @transform_0, window_bounds = array<i64: 1, 128>}, {transform_indices = @transform_1, window_bounds = array<i64: 1, 128>}, {transform_indices = @transform_2, window_bounds = array<i64: 128, 8>}, {transform_indices = @transform_3, window_bounds = array<i64: 128, 32>}, {transform_indices = @transform_4, window_bounds = array<i64: 128, 8>}, {transform_indices = @transform_5, window_bounds = array<i64: 128, 32>}, {transform_indices = @transform_6, window_bounds = array<i64: 128, 8>}, {transform_indices = @transform_7, window_bounds = array<i64: 8, 128>}]} {
    %c0_i32 = arith.constant 0 : i32
    %0 = arith.cmpi eq, %arg1, %c0_i32 : i32
    %1 = arith.extui %0 : i1 to i32
    %c0_i32_0 = arith.constant 0 : i32
    %2 = arith.cmpi ne, %1, %c0_i32_0 : i32
    scf.if %2 {
      %cst_39 = arith.constant 0.000000e+00 : f32
      %99 = vector.broadcast %cst_39 : f32 to vector<8x128xf32>
      %c0_40 = arith.constant 0 : index
      %c0_41 = arith.constant 0 : index
      %100 = vector.load %arg9[%c0_40, %c0_41] : memref<8x128xf32, #tpu.memory_space<vmem>>, vector<8x128xf32>
      tpu.vector_store %arg9[%c0_40, %c0_41], %99 {strides = array<i32>} : memref<8x128xf32, #tpu.memory_space<vmem>>, vector<8x128xf32>,
    } else {
    }
    %c0 = arith.constant 0 : index
    %c0_1 = arith.constant 0 : index
    %3 = vector.load %arg2[%c0, %c0_1] : memref<1x128xi32, #tpu.memory_space<vmem>>, vector<1x128xi32>
    %c0_2 = arith.constant 0 : index
    %c0_3 = arith.constant 0 : index
    %4 = vector.load %arg3[%c0_2, %c0_3] : memref<1x128xi32, #tpu.memory_space<vmem>>, vector<1x128xi32>
    %5 = tpu.iota {dimensions = array<i32: 1>} : vector<1x128xi32>
    %c1_i32 = arith.constant 1 : i32
    %6 = arith.muli %arg1, %c1_i32 : i32
    %7 = arith.addi %6, %arg0 : i32
    %c128_i32 = arith.constant 128 : i32
    %8 = arith.muli %7, %c128_i32 : i32
    %9 = vector.broadcast %8 : i32 to vector<1x128xi32>
    %10 = arith.addi %9, %5 : vector<1x128xi32>
    %c300_i32 = arith.constant 300 : i32
    %11 = vector.broadcast %c300_i32 : i32 to vector<1x128xi32>
    %12 = arith.cmpi slt, %10, %11 : vector<1x128xi32>
    %c3_i32 = arith.constant 3 : i32
    %13 = vector.broadcast %c3_i32 : i32 to vector<1x128xi32>
    %14 = arith.cmpi ne, %3, %13 : vector<1x128xi32>
    %c0_i32_4 = arith.constant 0 : i32
    %15 = vector.broadcast %c0_i32_4 : i32 to vector<1x128xi32>
    %16 = arith.cmpi ne, %4, %15 : vector<1x128xi32>
    %17 = arith.andi %14, %16 : vector<1x128xi1>
    %18 = arith.andi %17, %12 : vector<1x128xi1>
    %19 = arith.extui %18 : vector<1x128xi1> to vector<1x128xi32>
    %20 = arith.sitofp %19 : vector<1x128xi32> to vector<1x128xf32>
    %c0_5 = arith.constant 0 : index
    %c0_6 = arith.constant 0 : index
    %21 = vector.load %arg4[%c0_5, %c0_6] : memref<128x8xf32, #tpu.memory_space<vmem>>, vector<128x8xf32>
    %22 = tpu.transpose %21, [1, 0] : vector<128x8xf32> -> vector<8x128xf32>
    %23 = tpu.iota {dimensions = array<i32: 0>} : vector<32x128xi32>
    %cst = arith.constant 0.000000e+00 : f32
    %24 = vector.broadcast %cst : f32 to vector<1x128xf32>
    %c0_7 = arith.constant 0 : index
    %c0_8 = arith.constant 0 : index
    %25 = vector.load %arg5[%c0_7, %c0_8] : memref<128x32xf32, #tpu.memory_space<vmem>>, vector<128x32xf32>
    %26 = tpu.transpose %25, [1, 0] : vector<128x32xf32> -> vector<32x128xf32>
    %c0_9 = arith.constant 0 : index
    %c0_10 = arith.constant 0 : index
    %27 = vector.load %arg6[%c0_9, %c0_10] : memref<128x8xf32, #tpu.memory_space<vmem>>, vector<128x8xf32>
    %28 = tpu.transpose %27, [1, 0] : vector<128x8xf32> -> vector<8x128xf32>
    %cst_11 = arith.constant dense<0xFF800000> : vector<128xf32>
    %29 = vector.multi_reduction <maximumf>, %26, %cst_11 [0] : vector<32x128xf32> to vector<128xf32>
    %30 = vector.shape_cast %29 : vector<128xf32> to vector<1x128xf32>
    %31 = vector.broadcast %30 : vector<1x128xf32> to vector<32x128xf32>
    %32 = arith.subf %26, %31 : vector<32x128xf32>
    %33 = math.exp %32 : vector<32x128xf32>
    %cst_12 = arith.constant dense<0.000000e+00> : vector<128xf32>
    %34 = vector.multi_reduction <add>, %33, %cst_12 [0] : vector<32x128xf32> to vector<128xf32>
    %35 = vector.shape_cast %34 : vector<128xf32> to vector<1x128xf32>
    %36 = math.log %35 : vector<1x128xf32>
    %37 = vector.broadcast %3 : vector<1x128xi32> to vector<32x128xi32>
    %38 = arith.cmpi eq, %23, %37 : vector<32x128xi32>
    %cst_13 = arith.constant 0.000000e+00 : f32
    %39 = vector.broadcast %cst_13 : f32 to vector<32x128xf32>
    %40 = arith.select %38, %32, %39 : vector<32x128xi1>, vector<32x128xf32>
    %cst_14 = arith.constant dense<0.000000e+00> : vector<128xf32>
    %41 = vector.multi_reduction <add>, %40, %cst_14 [0] : vector<32x128xf32> to vector<128xf32>
    %42 = vector.shape_cast %41 : vector<128xf32> to vector<1x128xf32>
    %43 = arith.subf %36, %42 : vector<1x128xf32>
    %44 = arith.mulf %28, %22 : vector<8x128xf32>
    %cst_15 = arith.constant dense<0.000000e+00> : vector<128xf32>
    %45 = vector.multi_reduction <add>, %44, %cst_15 [0] : vector<8x128xf32> to vector<128xf32>
    %46 = vector.shape_cast %45 : vector<128xf32> to vector<1x128xf32>
    %cst_16 = arith.constant 5.000000e-02 : f32
    %47 = vector.broadcast %cst_16 : f32 to vector<1x128xf32>
    %48 = arith.addf %46, %47 : vector<1x128xf32>
    %cst_17 = arith.constant 2.000000e+00 : f32
    %49 = vector.broadcast %cst_17 : f32 to vector<1x128xf32>
    %50 = arith.mulf %49, %48 : vector<1x128xf32>
    %51 = arith.mulf %50, %48 : vector<1x128xf32>
    %52 = tpu.reciprocal %51 : vector<1x128xf32> -> vector<1x128xf32>
    %53 = math.log %48 : vector<1x128xf32>
    %cst_18 = arith.constant 0.000000e+00 : f32
    %54 = vector.broadcast %cst_18 : f32 to vector<1x128xf32>
    %55 = arith.select %18, %43, %54 : vector<1x128xi1>, vector<1x128xf32>
    %cst_19 = arith.constant 0.000000e+00 : f32
    %56 = vector.broadcast %cst_19 : f32 to vector<1x128xf32>
    %57 = arith.select %12, %52, %56 : vector<1x128xi1>, vector<1x128xf32>
    %cst_20 = arith.constant 0.000000e+00 : f32
    %58 = vector.broadcast %cst_20 : f32 to vector<1x128xf32>
    %59 = arith.select %12, %53, %58 : vector<1x128xi1>, vector<1x128xf32>
    %c0_21 = arith.constant 0 : index
    %c0_22 = arith.constant 0 : index
    %60 = vector.load %arg7[%c0_21, %c0_22] : memref<128x32xf32, #tpu.memory_space<vmem>>, vector<128x32xf32>
    %61 = tpu.transpose %60, [1, 0] : vector<128x32xf32> -> vector<32x128xf32>
    %c0_23 = arith.constant 0 : index
    %c0_24 = arith.constant 0 : index
    %62 = vector.load %arg8[%c0_23, %c0_24] : memref<128x8xf32, #tpu.memory_space<vmem>>, vector<128x8xf32>
    %63 = tpu.transpose %62, [1, 0] : vector<128x8xf32> -> vector<8x128xf32>
    %cst_25 = arith.constant dense<0xFF800000> : vector<128xf32>
    %64 = vector.multi_reduction <maximumf>, %61, %cst_25 [0] : vector<32x128xf32> to vector<128xf32>
    %65 = vector.shape_cast %64 : vector<128xf32> to vector<1x128xf32>
    %66 = vector.broadcast %65 : vector<1x128xf32> to vector<32x128xf32>
    %67 = arith.subf %61, %66 : vector<32x128xf32>
    %68 = math.exp %67 : vector<32x128xf32>
    %cst_26 = arith.constant dense<0.000000e+00> : vector<128xf32>
    %69 = vector.multi_reduction <add>, %68, %cst_26 [0] : vector<32x128xf32> to vector<128xf32>
    %70 = vector.shape_cast %69 : vector<128xf32> to vector<1x128xf32>
    %71 = math.log %70 : vector<1x128xf32>
    %72 = vector.broadcast %3 : vector<1x128xi32> to vector<32x128xi32>
    %73 = arith.cmpi eq, %23, %72 : vector<32x128xi32>
    %cst_27 = arith.constant 0.000000e+00 : f32
    %74 = vector.broadcast %cst_27 : f32 to vector<32x128xf32>
    %75 = arith.select %73, %67, %74 : vector<32x128xi1>, vector<32x128xf32>
    %cst_28 = arith.constant dense<0.000000e+00> : vector<128xf32>
    %76 = vector.multi_reduction <add>, %75, %cst_28 [0] : vector<32x128xf32> to vector<128xf32>
    %77 = vector.shape_cast %76 : vector<128xf32> to vector<1x128xf32>
    %78 = arith.subf %71, %77 : vector<1x128xf32>
    %79 = arith.mulf %63, %22 : vector<8x128xf32>
    %cst_29 = arith.constant dense<0.000000e+00> : vector<128xf32>
    %80 = vector.multi_reduction <add>, %79, %cst_29 [0] : vector<8x128xf32> to vector<128xf32>
    %81 = vector.shape_cast %80 : vector<128xf32> to vector<1x128xf32>
    %cst_30 = arith.constant 5.000000e-02 : f32
    %82 = vector.broadcast %cst_30 : f32 to vector<1x128xf32>
    %83 = arith.addf %81, %82 : vector<1x128xf32>
    %cst_31 = arith.constant 2.000000e+00 : f32
    %84 = vector.broadcast %cst_31 : f32 to vector<1x128xf32>
    %85 = arith.mulf %84, %83 : vector<1x128xf32>
    %86 = arith.mulf %85, %83 : vector<1x128xf32>
    %87 = tpu.reciprocal %86 : vector<1x128xf32> -> vector<1x128xf32>
    %88 = math.log %83 : vector<1x128xf32>
    %cst_32 = arith.constant 0.000000e+00 : f32
    %89 = vector.broadcast %cst_32 : f32 to vector<1x128xf32>
    %90 = arith.select %18, %78, %89 : vector<1x128xi1>, vector<1x128xf32>
    %cst_33 = arith.constant 0.000000e+00 : f32
    %91 = vector.broadcast %cst_33 : f32 to vector<1x128xf32>
    %92 = arith.select %12, %87, %91 : vector<1x128xi1>, vector<1x128xf32>
    %cst_34 = arith.constant 0.000000e+00 : f32
    %93 = vector.broadcast %cst_34 : f32 to vector<1x128xf32>
    %94 = arith.select %12, %88, %93 : vector<1x128xi1>, vector<1x128xf32>
    %c0_35 = arith.constant 0 : index
    %c0_36 = arith.constant 0 : index
    %95 = vector.load %arg9[%c0_35, %c0_36] : memref<8x128xf32, #tpu.memory_space<vmem>>, vector<8x128xf32>
    %96 = tpu.concatenate %20, %55, %57, %59, %90, %92, %94, %24 in 0 : vector<1x128xf32>, vector<1x128xf32>, vector<1x128xf32>, vector<1x128xf32>, vector<1x128xf32>, vector<1x128xf32>, vector<1x128xf32>, vector<1x128xf32> -> vector<8x128xf32>
    %97 = arith.addf %95, %96 : vector<8x128xf32>
    %c0_37 = arith.constant 0 : index
    %c0_38 = arith.constant 0 : index
    %98 = vector.load %arg9[%c0_37, %c0_38] : memref<8x128xf32, #tpu.memory_space<vmem>>, vector<8x128xf32>
    tpu.vector_store %arg9[%c0_37, %c0_38], %97 {strides = array<i32>} : memref<8x128xf32, #tpu.memory_space<vmem>>, vector<8x128xf32>,
    return
  }
  func.func @transform_0(%arg0: i32, %arg1: i32) -> (i32, i32) {
    %c1_i32 = arith.constant 1 : i32
    %0 = arith.muli %arg1, %c1_i32 : i32
    %1 = arith.addi %0, %arg0 : i32
    %c0_i32 = arith.constant 0 : i32
    %c0_i32_0 = arith.constant 0 : i32
    return %c0_i32, %1 : i32, i32
  }
  func.func @transform_1(%arg0: i32, %arg1: i32) -> (i32, i32) {
    %c1_i32 = arith.constant 1 : i32
    %0 = arith.muli %arg1, %c1_i32 : i32
    %1 = arith.addi %0, %arg0 : i32
    %c0_i32 = arith.constant 0 : i32
    %c0_i32_0 = arith.constant 0 : i32
    return %c0_i32, %1 : i32, i32
  }
  func.func @transform_2(%arg0: i32, %arg1: i32) -> (i32, i32) {
    %c1_i32 = arith.constant 1 : i32
    %0 = arith.muli %arg1, %c1_i32 : i32
    %1 = arith.addi %0, %arg0 : i32
    %c2_i32 = arith.constant 2 : i32
    %2 = arith.minsi %1, %c2_i32 : i32
    %c0_i32 = arith.constant 0 : i32
    %c0_i32_0 = arith.constant 0 : i32
    return %2, %c0_i32 : i32, i32
  }
  func.func @transform_3(%arg0: i32, %arg1: i32) -> (i32, i32) {
    %c1_i32 = arith.constant 1 : i32
    %0 = arith.muli %arg1, %c1_i32 : i32
    %1 = arith.addi %0, %arg0 : i32
    %c2_i32 = arith.constant 2 : i32
    %2 = arith.minsi %1, %c2_i32 : i32
    %c0_i32 = arith.constant 0 : i32
    %c0_i32_0 = arith.constant 0 : i32
    return %2, %c0_i32 : i32, i32
  }
  func.func @transform_4(%arg0: i32, %arg1: i32) -> (i32, i32) {
    %c1_i32 = arith.constant 1 : i32
    %0 = arith.muli %arg1, %c1_i32 : i32
    %1 = arith.addi %0, %arg0 : i32
    %c2_i32 = arith.constant 2 : i32
    %2 = arith.minsi %1, %c2_i32 : i32
    %c0_i32 = arith.constant 0 : i32
    %c0_i32_0 = arith.constant 0 : i32
    return %2, %c0_i32 : i32, i32
  }
  func.func @transform_5(%arg0: i32, %arg1: i32) -> (i32, i32) {
    %c1_i32 = arith.constant 1 : i32
    %0 = arith.muli %arg1, %c1_i32 : i32
    %1 = arith.addi %0, %arg0 : i32
    %c2_i32 = arith.constant 2 : i32
    %2 = arith.minsi %1, %c2_i32 : i32
    %c0_i32 = arith.constant 0 : i32
    %c0_i32_0 = arith.constant 0 : i32
    return %2, %c0_i32 : i32, i32
  }
  func.func @transform_6(%arg0: i32, %arg1: i32) -> (i32, i32) {
    %c1_i32 = arith.constant 1 : i32
    %0 = arith.muli %arg1, %c1_i32 : i32
    %1 = arith.addi %0, %arg0 : i32
    %c2_i32 = arith.constant 2 : i32
    %2 = arith.minsi %1, %c2_i32 : i32
    %c0_i32 = arith.constant 0 : i32
    %c0_i32_0 = arith.constant 0 : i32
    return %2, %c0_i32 : i32, i32
  }
  func.func @transform_7(%arg0: i32, %arg1: i32) -> (i32, i32) {
    %c0_i32 = arith.constant 0 : i32
    %c0_i32_0 = arith.constant 0 : i32
    return %arg0, %c0_i32 : i32, i32
  }
}

</mosaic_0001>

<bundles_post_ra>
// kernel: tpu_custom_call.1
= control target key start
LH: loop header
LB: loop body
LE: loop exit
PB: predicated region body
PF: predicated region fallthrough
CT: control target
= control target key end

     0   :  { %12 = vsyncpa [#allocation3], 0  ;;  %s1347_s24 = smov 0   ;;  %s1349_s25 = smov 0   ;;  %s1556_s0 = inlined_call_operand.vmem [shape: s32[1,384], index: 0, kind: input, shape index: {}]   ;;  %s1557_s1 = inlined_call_operand.vmem [shape: s32[1,384], index: 1, kind: input, shape index: {}]   ;;  %s1558_s2 = inlined_call_operand.vmem [shape: f32[300,8], index: 2, kind: input, shape index: {}]   ;;  %s1559_s3 = inlined_call_operand.vmem [shape: f32[300,32], index: 3, kind: input, shape index: {}]   ;;  %s1560_s4 = inlined_call_operand.vmem [shape: f32[300,8], index: 4, kind: input, shape index: {}]   ;;  %s1561_s5 = inlined_call_operand.vmem [shape: f32[300,32], index: 5, kind: input, shape index: {}]   ;;  %s1562_s6 = inlined_call_operand.vmem [shape: f32[300,8], index: 6, kind: input, shape index: {}]   ;;  %s1563_s7 = inlined_call_operand.hbm [shape: f32[8,128], index: 7, kind: output, shape index: {}]  }
   0x1   :  { %s1351_s26 = smov 0  }
   0x2 LB: > { %s1170_s27 = sadd.s32 4294967295, %s1302_s26   ;;  %s27_s28 = sadd.s32 1, %s1298_s25  ;;  %s1302_s26 = sphi %s1351_s26, %s18_s26   ;;  %s1298_s25 = sphi %s1349_s25, %s1566_s25   ;;  %s1294_s24 = sphi %s1347_s24, %s1565_s24  }
   0x3   : > { %p28_p0 = scmp.ge.s32.totalorder %s27_s28, 3  ;;  %p1173_p1 = scmp.ge.s32.totalorder %s1302_s26, 1 }
   0x4   : > { %p419_p2 = scmp.lt.s32.totalorder %s1302_s26, 4 }
   0x5   : > { %s1568_s28 = smov (%p28_p0, %s27_s28), 0 }
   0x6   : > { %p420_p3 = pnand %p1173_p1, %p419_p2 }
   0x7   : > { %p510_p4 = scmp.lt.s32.totalorder (!%p420_p3), %s1294_s24, 2  ;;  %p1184_p6 = scmp.ne.s32.totalorder (!%p420_p3), %s1294_s24, 0 }
   0x8   : > { %423 = sbr.rel (%p420_p3) target bundleno = 326 (0x146), region = 48 }
   0xd   : > { %s1370_s29 = scalar_select %p510_p4, %s1294_s24, 2 }
   0xf   : > { %s512_s9 = scalar_lea.vmem %s1556_s0, %s1370_s29  ;;  %s517_s12 = scalar_lea.vmem %s1557_s1, %s1370_s29 }
  0x10   : > { %s1174_s13 = sshll.u32 %s1370_s29, 4 }
  0x11   : > { %p527_p5 = scmp.lt.s32.totalorder %s1174_s13, 37 }
  0x13   : > { %s1570_s13 = smov (!%p527_p5, %s1174_s13), 37  ;;  %622 = sbr.rel (%p1184_p6) target bundleno = 26 (0x1a), region = 52 }
  0x14   : > { %s1175_s14 = sshll.u32 %s1570_s13, 3 }
  0x15   : > { %s1384_s17 = scalar_lea.vmem %s1558_s2, %s1175_s14  ;;  %s1389_s20 = scalar_lea.vmem %s1559_s3, %s1175_s14 }
  0x16   : > { %s1394_s23 = scalar_lea.vmem %s1560_s4, %s1175_s14  ;;  %s1399_s10 = scalar_lea.vmem %s1561_s5, %s1175_s14 }
  0x17   : > { %s1404_s15 = scalar_lea.vmem %s1562_s6, %s1175_s14 }
  0x18   : > { %v1304_v0 = vmov 0.0  }
  0x19   : > { %623 = vst [vmem:[#allocation2] sm:$0xff] %v1304_v0 }
  0x1a PF: > { %v692_v1 = vld [vmem:[%s1389_s20] sm:$0xff]  ;;  %v693_v3 = vld [vmem:[%s1389_s20 + $0x8] sm:$0xff]  ;;  %v694_v5 = vld [vmem:[%s1389_s20 + $0x10] sm:$0xff]  ;;  %vm1029_vm9 = vcmask 1040384   ;;  %vm1031_vm10 = vcmask 1041408   ;;  %vm1033_vm11 = vcmask 1042432  }
  0x1b   : > { %v639_v2 = vld [vmem:[%s1384_s17] sm:$0xff]  ;;  %708 = vxpose.xlu1.b32.start [1/16] (narrow) %v692_v1, 32  ;;  %v640_v4 = vld [vmem:[%s1384_s17 + $0x8] sm:$0xff]  ;;  %v641_v6 = vld [vmem:[%s1384_s17 + $0x10] sm:$0xff]  ;;  %vm1035_vm12 = vcmask 1043456   ;;  %vm1037_vm13 = vcmask 1044480  }
  0x1c   : > { %655 = vxpose.xlu0.b32.start [1/16] (narrow) %v639_v2, 8  ;;  %v695_v7 = vld [vmem:[%s1389_s20 + $0x18] sm:$0xff]  ;;  %v696_v9 = vld [vmem:[%s1389_s20 + $0x20] sm:$0xff]  ;;  %v697_v11 = vld [vmem:[%s1389_s20 + $0x28] sm:$0xff]  ;;  %vm1039_vm14 = vcmask 1045504   ;;  %vm1041_vm15 = vcmask 1046528  }
  0x1d   : > { %v642_v8 = vld [vmem:[%s1384_s17 + $0x18] sm:$0xff]  ;;  %v643_v10 = vld [vmem:[%s1384_s17 + $0x20] sm:$0xff]  ;;  %v644_v12 = vld [vmem:[%s1384_s17 + $0x28] sm:$0xff]  ;;  %p1532_p7 = scmp.eq.s32.totalorder %s1170_s27, 2 }
  0x1e   : > { %v698_v13 = vld [vmem:[%s1389_s20 + $0x30] sm:$0xff]  ;;  %v699_v15 = vld [vmem:[%s1389_s20 + $0x38] sm:$0xff]  ;;  %v700_v17 = vld [vmem:[%s1389_s20 + $0x40] sm:$0xff] }
  0x1f   : > { %709 = vxpose.xlu1.b32.cont [2/16] (narrow) %v693_v3, 32  ;;  %v645_v14 = vld [vmem:[%s1384_s17 + $0x30] sm:$0xff]  ;;  %v646_v16 = vld [vmem:[%s1384_s17 + $0x38] sm:$0xff]  ;;  %v647_v18 = vld [vmem:[%s1384_s17 + $0x40] sm:$0xff] }
  0x20   : > { %656 = vxpose.xlu0.b32.cont [2/16] (narrow) %v640_v4, 8  ;;  %v701_v19 = vld [vmem:[%s1389_s20 + $0x48] sm:$0xff]  ;;  %v702_v21 = vld [vmem:[%s1389_s20 + $0x50] sm:$0xff]  ;;  %v703_v23 = vld [vmem:[%s1389_s20 + $0x58] sm:$0xff] }
  0x21   : > { %v648_v20 = vld [vmem:[%s1384_s17 + $0x48] sm:$0xff]  ;;  %v649_v22 = vld [vmem:[%s1384_s17 + $0x50] sm:$0xff]  ;;  %v650_v24 = vld [vmem:[%s1384_s17 + $0x58] sm:$0xff] }
  0x22   : > { %v704_v25 = vld [vmem:[%s1389_s20 + $0x60] sm:$0xff]  ;;  %v705_v27 = vld [vmem:[%s1389_s20 + $0x68] sm:$0xff]  ;;  %v706_v29 = vld [vmem:[%s1389_s20 + $0x70] sm:$0xff] }
  0x23   : > { %710 = vxpose.xlu1.b32.cont [3/16] (narrow) %v694_v5, 32  ;;  %v651_v26 = vld [vmem:[%s1384_s17 + $0x60] sm:$0xff]  ;;  %v652_v28 = vld [vmem:[%s1384_s17 + $0x68] sm:$0xff]  ;;  %v653_v30 = vld [vmem:[%s1384_s17 + $0x70] sm:$0xff] }
  0x24   : > { %657 = vxpose.xlu0.b32.cont [3/16] (narrow) %v641_v6, 8  ;;  %v707_v31 = vld [vmem:[%s1389_s20 + $0x78] sm:$0xff]  ;;  %v740_v33 = vld [vmem:[%s1394_s23] sm:$0xff]  ;;  %v741_v35 = vld [vmem:[%s1394_s23 + $0x8] sm:$0xff] }
  0x25   : > { %v654_v32 = vld [vmem:[%s1384_s17 + $0x78] sm:$0xff]  ;;  %v858_v34 = vld [vmem:[%s1399_s10] sm:$0xff]  ;;  %v859_v36 = vld [vmem:[%s1399_s10 + $0x8] sm:$0xff] }
  0x26   : > { %v742_v37 = vld [vmem:[%s1394_s23 + $0x10] sm:$0xff]  ;;  %v743_v39 = vld [vmem:[%s1394_s23 + $0x18] sm:$0xff]  ;;  %v744_v41 = vld [vmem:[%s1394_s23 + $0x20] sm:$0xff] }
  0x27   : > { %711 = vxpose.xlu1.b32.cont [4/16] (narrow) %v695_v7, 32  ;;  %v860_v38 = vld [vmem:[%s1399_s10 + $0x10] sm:$0xff]  ;;  %v861_v40 = vld [vmem:[%s1399_s10 + $0x18] sm:$0xff]  ;;  %v862_v42 = vld [vmem:[%s1399_s10 + $0x20] sm:$0xff] }
  0x28   : > { %658 = vxpose.xlu0.b32.cont [4/16] (narrow) %v642_v8, 8  ;;  %v745_v43 = vld [vmem:[%s1394_s23 + $0x28] sm:$0xff]  ;;  %v746_v45 = vld [vmem:[%s1394_s23 + $0x30] sm:$0xff]  ;;  %v747_v47 = vld [vmem:[%s1394_s23 + $0x38] sm:$0xff] }
  0x29   : > { %v863_v44 = vld [vmem:[%s1399_s10 + $0x28] sm:$0xff]  ;;  %v864_v46 = vld [vmem:[%s1399_s10 + $0x30] sm:$0xff]  ;;  %v865_v48 = vld [vmem:[%s1399_s10 + $0x38] sm:$0xff] }
  0x2a   : > { %v748_v49 = vld [vmem:[%s1394_s23 + $0x40] sm:$0xff]  ;;  %v749_v51 = vld [vmem:[%s1394_s23 + $0x48] sm:$0xff]  ;;  %v750_v53 = vld [vmem:[%s1394_s23 + $0x50] sm:$0xff] }
  0x2b   : > { %712 = vxpose.xlu1.b32.cont [5/16] (narrow) %v696_v9, 32  ;;  %v866_v50 = vld [vmem:[%s1399_s10 + $0x40] sm:$0xff]  ;;  %v867_v52 = vld [vmem:[%s1399_s10 + $0x48] sm:$0xff]  ;;  %v868_v54 = vld [vmem:[%s1399_s10 + $0x50] sm:$0xff] }
  0x2c   : > { %659 = vxpose.xlu0.b32.cont [5/16] (narrow) %v643_v10, 8  ;;  %v751_v55 = vld [vmem:[%s1394_s23 + $0x58] sm:$0xff]  ;;  %v752_v57 = vld [vmem:[%s1394_s23 + $0x60] sm:$0xff]  ;;  %v753_v59 = vld [vmem:[%s1394_s23 + $0x68] sm:$0xff] }
  0x2d   : > { %v869_v56 = vld [vmem:[%s1399_s10 + $0x58] sm:$0xff]  ;;  %v870_v58 = vld [vmem:[%s1399_s10 + $0x60] sm:$0xff]  ;;  %v871_v60 = vld [vmem:[%s1399_s10 + $0x68] sm:$0xff] }
  0x2e   : > { %v754_v61 = vld [vmem:[%s1394_s23 + $0x70] sm:$0xff]  ;;  %v755_v63 = vld [vmem:[%s1394_s23 + $0x78] sm:$0xff]  ;;  %v906_v1 = vld [vmem:[%s1404_s15] sm:$0xff] }
  0x2f   : > { %713 = vxpose.xlu1.b32.cont [6/16] (narrow) %v697_v11, 32  ;;  %v872_v62 = vld [vmem:[%s1399_s10 + $0x70] sm:$0xff]  ;;  %v873_v0 = vld [vmem:[%s1399_s10 + $0x78] sm:$0xff]  ;;  %v907_v2 = vld [vmem:[%s1404_s15 + $0x8] sm:$0xff] }
  0x30   : > { %660 = vxpose.xlu0.b32.cont [6/16] (narrow) %v644_v12, 8  ;;  %v908_v3 = vld [vmem:[%s1404_s15 + $0x10] sm:$0xff]  ;;  %v909_v5 = vld [vmem:[%s1404_s15 + $0x18] sm:$0xff]  ;;  %v910_v6 = vld [vmem:[%s1404_s15 + $0x20] sm:$0xff] }
  0x31   : > { %v911_v8 = vld [vmem:[%s1404_s15 + $0x28] sm:$0xff]  ;;  %v912_v10 = vld [vmem:[%s1404_s15 + $0x30] sm:$0xff]  ;;  %v913_v11 = vld [vmem:[%s1404_s15 + $0x38] sm:$0xff] }
  0x33   : > { %714 = vxpose.xlu1.b32.cont [7/16] (narrow) %v698_v13, 32  ;;  %v914_v13 = vld [vmem:[%s1404_s15 + $0x40] sm:$0xff] }
  0x34   : > { %661 = vxpose.xlu0.b32.cont [7/16] (narrow) %v645_v14, 8 }
  0x37   : > { %715 = vxpose.xlu1.b32.cont [8/16] (narrow) %v699_v15, 32 }
  0x38   : > { %662 = vxpose.xlu0.b32.cont [8/16] (narrow) %v646_v16, 8  ;;  %v915_v16 = vld [vmem:[%s1404_s15 + $0x48] sm:$0xff] }
  0x3b   : > { %716 = vxpose.xlu1.b32.cont [9/16] (narrow) %v700_v17, 32 }
  0x3c   : > { %663 = vxpose.xlu0.b32.cont [9/16] (narrow) %v647_v18, 8  ;;  %v916_v18 = vld [vmem:[%s1404_s15 + $0x50] sm:$0xff] }
  0x3f   : > { %717 = vxpose.xlu1.b32.cont [10/16] (narrow) %v701_v19, 32 }
  0x40   : > { %664 = vxpose.xlu0.b32.cont [10/16] (narrow) %v648_v20, 8  ;;  %v917_v20 = vld [vmem:[%s1404_s15 + $0x58] sm:$0xff] }
  0x43   : > { %718 = vxpose.xlu1.b32.cont [11/16] (narrow) %v702_v21, 32 }
  0x44   : > { %665 = vxpose.xlu0.b32.cont [11/16] (narrow) %v649_v22, 8  ;;  %v918_v22 = vld [vmem:[%s1404_s15 + $0x60] sm:$0xff] }
  0x47   : > { %719 = vxpose.xlu1.b32.cont [12/16] (narrow) %v703_v23, 32 }
  0x48   : > { %666 = vxpose.xlu0.b32.cont [12/16] (narrow) %v650_v24, 8  ;;  %v919_v24 = vld [vmem:[%s1404_s15 + $0x68] sm:$0xff] }
  0x4b   : > { %720 = vxpose.xlu1.b32.cont [13/16] (narrow) %v704_v25, 32 }
  0x4c   : > { %667 = vxpose.xlu0.b32.cont [13/16] (narrow) %v651_v26, 8  ;;  %v920_v26 = vld [vmem:[%s1404_s15 + $0x70] sm:$0xff] }
  0x4f   : > { %721 = vxpose.xlu1.b32.cont [14/16] (narrow) %v705_v27, 32 }
  0x50   : > { %668 = vxpose.xlu0.b32.cont [14/16] (narrow) %v652_v28, 8 }
  0x53   : > { %722 = vxpose.xlu1.b32.cont [15/16] (narrow) %v706_v29, 32  ;;  %v921_v29 = vld [vmem:[%s1404_s15 + $0x78] sm:$0xff] }
  0x54   : > { %669 = vxpose.xlu0.b32.cont [15/16] (narrow) %v653_v30, 8 }
  0x57   : > { %723 = vxpose.xlu1.b32.end [16/16] (narrow) %v707_v31, 32 }
  0x58   : > { %670 = vxpose.xlu0.b32.end [16/16] (narrow) %v654_v32, 8 }
  0x5b   : > { %756 = vxpose.xlu1.b32.start [1/16] (narrow) %v740_v33, 8 }
  0x5c   : > { %874 = vxpose.xlu0.b32.start [1/16] (narrow) %v858_v34, 32 }
  0x5f   : > { %757 = vxpose.xlu1.b32.cont [2/16] (narrow) %v741_v35, 8 }
  0x60   : > { %875 = vxpose.xlu0.b32.cont [2/16] (narrow) %v859_v36, 32 }
  0x63   : > { %758 = vxpose.xlu1.b32.cont [3/16] (narrow) %v742_v37, 8 }
  0x64   : > { %876 = vxpose.xlu0.b32.cont [3/16] (narrow) %v860_v38, 32 }
  0x67   : > { %759 = vxpose.xlu1.b32.cont [4/16] (narrow) %v743_v39, 8 }
  0x68   : > { %877 = vxpose.xlu0.b32.cont [4/16] (narrow) %v861_v40, 32 }
  0x6b   : > { %760 = vxpose.xlu1.b32.cont [5/16] (narrow) %v744_v41, 8 }
  0x6c   : > { %878 = vxpose.xlu0.b32.cont [5/16] (narrow) %v862_v42, 32 }
  0x6f   : > { %761 = vxpose.xlu1.b32.cont [6/16] (narrow) %v745_v43, 8 }
  0x70   : > { %879 = vxpose.xlu0.b32.cont [6/16] (narrow) %v863_v44, 32 }
  0x73   : > { %762 = vxpose.xlu1.b32.cont [7/16] (narrow) %v746_v45, 8 }
  0x74   : > { %880 = vxpose.xlu0.b32.cont [7/16] (narrow) %v864_v46, 32 }
  0x77   : > { %763 = vxpose.xlu1.b32.cont [8/16] (narrow) %v747_v47, 8 }
  0x78   : > { %881 = vxpose.xlu0.b32.cont [8/16] (narrow) %v865_v48, 32 }
  0x7b   : > { %764 = vxpose.xlu1.b32.cont [9/16] (narrow) %v748_v49, 8 }
  0x7c   : > { %882 = vxpose.xlu0.b32.cont [9/16] (narrow) %v866_v50, 32 }
  0x7f   : > { %765 = vxpose.xlu1.b32.cont [10/16] (narrow) %v749_v51, 8 }
  0x80   : > { %883 = vxpose.xlu0.b32.cont [10/16] (narrow) %v867_v52, 32  ;;  %v626_v52 = vlaneseq }
  0x83   : > { %766 = vxpose.xlu1.b32.cont [11/16] (narrow) %v750_v53, 8 }
  0x84   : > { %884 = vxpose.xlu0.b32.cont [11/16] (narrow) %v868_v54, 32 }
  0x87   : > { %767 = vxpose.xlu1.b32.cont [12/16] (narrow) %v751_v55, 8 }
  0x88   : > { %885 = vxpose.xlu0.b32.cont [12/16] (narrow) %v869_v56, 32 }
  0x8b   : > { %768 = vxpose.xlu1.b32.cont [13/16] (narrow) %v752_v57, 8  ;;  %v688_v57 = vshrl.u32 %v626_v52, 7 }
  0x8c   : > { %886 = vxpose.xlu0.b32.cont [13/16] (narrow) %v870_v58, 32 }
  0x8f   : > { %769 = vxpose.xlu1.b32.cont [14/16] (narrow) %v753_v59, 8 }
  0x90   : > { %887 = vxpose.xlu0.b32.cont [14/16] (narrow) %v871_v60, 32 }
  0x93   : > { %770 = vxpose.xlu1.b32.cont [15/16] (narrow) %v754_v61, 8 }
  0x94   : > { %888 = vxpose.xlu0.b32.cont [15/16] (narrow) %v872_v62, 32 }
  0x97   : > { %771 = vxpose.xlu1.b32.end [16/16] (narrow) %v755_v63, 8  ;;  %v724_v4 = vpop.trf.xlu1 }
  0x98   : > { %889 = vxpose.xlu0.b32.end [16/16] (narrow) %v873_v0, 32  ;;  %v1486_v28 = vpop.trf.xlu0 }
  0x9b   : > { %v725_v7 = vpop.trf.xlu1 }
  0x9c   : > { %922 = vxpose.xlu0.b32.start [1/16] (narrow) %v906_v1, 8  ;;  %v788_v14 = vmax.f32 %v724_v4, %v725_v7 }
  0x9f   : > { %v726_v9 = vpop.trf.xlu1 }
  0xa0   : > { %923 = vxpose.xlu0.b32.cont [2/16] (narrow) %v907_v2, 8 }
  0xa3   : > { %v727_v12 = vpop.trf.xlu1 }
  0xa4   : > { %924 = vxpose.xlu0.b32.cont [3/16] (narrow) %v908_v3, 8  ;;  %v789_v15 = vmax.f32 %v726_v9, %v727_v12  ;;  %v1493_v3 = vsub.s32 0, %v688_v57 }
  0xa6   : > { %v790_v17 = vmax.f32 %v788_v14, %v789_v15 }
  0xa8   : > { %925 = vxpose.xlu0.b32.cont [4/16] (narrow) %v909_v5, 8  ;;  %v791_v19 = vrot.slane %v790_v17, 4  ;;  %v1500_v5 = vld [vmem:[%s512_s9] sm:$0x1]  ;;  %s1185_s9 = sshll.u32 %s1294_s24, 7  ;;  %s1306_s24 = smov [#allocation2]  }
  0xa9   : > { %vm633_vm4 = vcmp.ne.s32.totalorder %v1500_v5, 3  ;;  %s1054_s29 = sshll.u32 %s1306_s24, 4  ;;  %s1055_s29 = int_to_ptr.vmem [resolvable:$true] %s1054_s29 }
  0xaa   : > { %v792_v21 = vmax.f32 %v790_v17, %v791_v19  ;;  %s1252_s19 = scalar_lea.vmem %s1055_s29, 128  ;;  %p1259_p11 = scmp.lt.s32.totalorder %s1055_s29, %s1055_s29 }
  0xab   : > { %p1253_p8 = scmp.ne.s32.totalorder %s1055_s29, %s1252_s19  ;;  %p1260_p12 = scmp.lt.s32.totalorder %s1252_s19, %s1252_s19 }
  0xac   : > { %926 = vxpose.xlu0.b32.cont [5/16] (narrow) %v910_v6, 8  ;;  %v793_v23 = vrot.slane %v792_v21, 2 }
  0xad   : > { %p1254_p9 = pnand %p1253_p8, %p1532_p7  ;;  %p1261_p13 = por %p1260_p12, %p1259_p11 }
  0xae   : > { %v794_v25 = vmax.f32 %v792_v21, %v793_v23 }
  0xaf   : > { %p1255_p10 = pneg %p1254_p9 }
  0xb0   : > { %927 = vxpose.xlu0.b32.cont [6/16] (narrow) %v911_v8, 8  ;;  %v795_v27 = vrot.slane %v794_v25, 1 }
  0xb1   : > { %p1262_p0 = pnand %p1261_p13, %p1255_p10 }
  0xb2   : > { %v796_v30 = vmax.f32 %v794_v25, %v795_v27 }
  0xb4   : > { %928 = vxpose.xlu0.b32.cont [7/16] (narrow) %v912_v10, 8  ;;  %v797_v32 = vsub.f32 %v724_v4, %v796_v30  ;;  %v798_v33 = vsub.f32 %v725_v7, %v796_v30  ;;  %v799_v36 = vsub.f32 %v726_v9, %v796_v30  ;;  %v1489_v39 = vsub.f32 %v727_v12, %v796_v30 }
  0xb5   : > { %v689_v9 = vadd.s32 8, %v688_v57  ;;  %v823_v10 = vrot.slane %v1500_v5, %v1493_v3 }
  0xb6   : > { %v801_v35 = vmul.f32 1.442695, %v797_v32  ;;  %v803_v37 = vmul.f32 1.442695, %v798_v33  ;;  %v805_v40 = vmul.f32 1.442695, %v799_v36 }
  0xb7   : > { %v807_v44 = vmul.f32 1.442695, %v1489_v39  ;;  %vm824_vm0 = vcmp.eq.s32.totalorder %v688_v57, %v823_v10  ;;  %vm825_vm1 = vcmp.eq.s32.totalorder %v689_v9, %v823_v10  ;;  %v630_v9 = vstv %s1185_s9 }
  0xb8   : > { %929 = vxpose.xlu0.b32.cont [8/16] (narrow) %v913_v11, 8  ;;  %1224 = vpow2.f32 %v801_v35  ;;  %v828_v15 = vsel %vm824_vm0, %v797_v32, 0.0 }
  0xb9   : > { %1226 = vpow2.f32 %v803_v37 }
  0xba   : > { %1228 = vpow2.f32 %v805_v40 }
  0xbb   : > { %1230 = vpow2.f32 %v807_v44 }
  0xbc   : > { %930 = vxpose.xlu0.b32.cont [9/16] (narrow) %v914_v13, 8  ;;  %v690_v13 = vadd.s32 16, %v688_v57 }
  0xbe   : > { %vm826_vm2 = vcmp.eq.s32.totalorder %v690_v13, %v823_v10 }
  0xbf   : > { %v830_v23 = vsel %vm826_vm2, %v799_v36, 0.0 }
  0xc0   : > { %931 = vxpose.xlu0.b32.cont [10/16] (narrow) %v915_v16, 8  ;;  %v829_v16 = vsel %vm825_vm1, %v798_v33, 0.0 }
  0xc4   : > { %932 = vxpose.xlu0.b32.cont [11/16] (narrow) %v916_v18, 8  ;;  %v691_v18 = vadd.s32 24, %v688_v57 }
  0xc5   : > { %v1225_v49 = vpop.eup %1224 }
  0xc6   : > { %v1227_v51 = vpop.eup %1226  ;;  %vm827_vm3 = vcmp.eq.s32.totalorder %v691_v18, %v823_v10 }
  0xc7   : > { %v809_v54 = vadd.f32 %v1227_v51, %v1225_v49  ;;  %v1229_v56 = vpop.eup %1228 }
  0xc8   : > { %933 = vxpose.xlu0.b32.cont [12/16] (narrow) %v917_v20, 8  ;;  %v1231_v1 = vpop.eup %1230 }
  0xc9   : > { %v810_v62 = vadd.f32 %v1229_v56, %v809_v54 }
  0xcb   : > { %v811_v7 = vadd.f32 %v1231_v1, %v810_v62 }
  0xcc   : > { %934 = vxpose.xlu0.b32.cont [13/16] (narrow) %v918_v22, 8  ;;  %v832_v22 = vadd.f32 %v829_v16, %v828_v15 }
  0xcd   : > { %v812_v11 = vrot.slane %v811_v7, 4 }
  0xcf   : > { %v813_v14 = vadd.f32 %v812_v11, %v811_v7  ;;  %v627_v7 = vand.u32 127, %v626_v52 }
  0xd0   : > { %935 = vxpose.xlu0.b32.cont [14/16] (narrow) %v919_v24, 8 }
  0xd1   : > { %v814_v21 = vrot.slane %v813_v14, 2 }
  0xd3   : > { %v815_v30 = vadd.f32 %v814_v21, %v813_v14  ;;  %v631_v14 = vadd.s32 %v630_v9, %v627_v7 }
  0xd4   : > { %936 = vxpose.xlu0.b32.cont [15/16] (narrow) %v920_v26, 8 }
  0xd5   : > { %v816_v36 = vrot.slane %v815_v30, 1  ;;  %vm632_vm7 = vcmp.lt.s32.totalorder %v631_v14, 300 }
  0xd7   : > { %v772_v4 = vpop.trf.xlu1 }
  0xd8   : > { %937 = vxpose.xlu0.b32.end [16/16] (narrow) %v921_v29, 8  ;;  %v890_v31 = vpop.trf.xlu0  ;;  %v842_v8 = vmul.f32 %v772_v4, %v1486_v28 }
  0xda   : > { %v843_v12 = vrot.slane %v842_v8, 4 }
  0xdc   : > { %v891_v34 = vpop.trf.xlu0  ;;  %v844_v17 = vadd.f32 %v843_v12, %v842_v8 }
  0xdd   : > { %v954_v41 = vmax.f32 %v890_v31, %v891_v34 }
  0xde   : > { %v845_v24 = vrot.slane %v844_v17, 2 }
  0xe0   : > { %v892_v38 = vpop.trf.xlu0  ;;  %v846_v35 = vadd.f32 %v845_v24, %v844_v17 }
  0xe4   : > { %v893_v42 = vpop.trf.xlu0 }
  0xe5   : > { %v955_v43 = vmax.f32 %v892_v38, %v893_v42 }
  0xe7   : > { %v956_v45 = vmax.f32 %v954_v41, %v955_v43 }
  0xe9   : > { %v957_v46 = vrot.slane %v956_v45, 4 }
  0xeb   : > { %v958_v47 = vmax.f32 %v956_v45, %v957_v46 }
  0xed   : > { %v959_v48 = vrot.slane %v958_v47, 2 }
  0xef   : > { %v960_v50 = vmax.f32 %v958_v47, %v959_v48  ;;  %v817_v47 = vadd.f32 %v816_v36, %v815_v30 }
  0xf1   : > { %v961_v53 = vrot.slane %v960_v50, 1 }
  0xf3   : > { %v962_v55 = vmax.f32 %v960_v50, %v961_v53 }
  0xf5   : > { %v963_v58 = vsub.f32 %v890_v31, %v962_v55  ;;  %v964_v59 = vsub.f32 %v891_v34, %v962_v55  ;;  %v965_v60 = vsub.f32 %v892_v38, %v962_v55  ;;  %v966_v61 = vsub.f32 %v893_v42, %v962_v55 }
  0xf6   : > { %v833_v31 = vadd.f32 %v832_v22, %v830_v23  ;;  %v831_v34 = vsel %vm827_vm3, %v1489_v39, 0.0  ;;  %v847_v42 = vrot.slane %v846_v35, 1 }
  0xf7   : > { %v967_v63 = vmul.f32 1.442695, %v963_v58  ;;  %v969_v0 = vmul.f32 1.442695, %v964_v59  ;;  %v971_v2 = vmul.f32 1.442695, %v965_v60 }
  0xf8   : > { %v973_v6 = vmul.f32 1.442695, %v966_v61  ;;  %v986_v32 = vsel %vm824_vm0, %v963_v58, 0.0  ;;  %v987_v33 = vsel %vm825_vm1, %v964_v59, 0.0  ;;  %v834_v41 = vadd.f32 %v833_v31, %v831_v34 }
  0xf9   : > { %1232 = vpow2.f32 %v967_v63  ;;  %v990_v40 = vadd.f32 %v987_v33, %v986_v32  ;;  %v988_v44 = vsel %vm826_vm2, %v965_v60, 0.0  ;;  %v848_v49 = vadd.f32 %v847_v42, %v846_v35 }
  0xfa   : > { %1234 = vpow2.f32 %v969_v0  ;;  %v835_v48 = vrot.slane %v834_v41, 4  ;;  %v989_v51 = vsel %vm827_vm3, %v966_v61, 0.0  ;;  %v1305_v31 = vmov 0.0  }
  0xfb   : > { %1236 = vpow2.f32 %v971_v2  ;;  %v991_v46 = vadd.f32 %v990_v40, %v988_v44  ;;  %v849_v55 = vadd.f32 0.05, %v848_v49 }
  0xfc   : > { %1238 = vpow2.f32 %v973_v6  ;;  %v836_v54 = vadd.f32 %v835_v48, %v834_v41 }
  0xfd   : > { %v992_v39 = vadd.f32 %v991_v46, %v989_v51  ;;  %1240 = vlog2.f32 %v817_v47  ;;  %v850_v63 = vmul.f32 2.0, %v849_v55  ;;  %v1016_v47 = vld [vmem:[#allocation2] sm:$0xff] }
  0xfe   : > { %v837_v60 = vrot.slane %v836_v54, 2 }
  0xff   : > { %v993_v59 = vrot.slane %v992_v39, 4  ;;  %v851_v4 = vmul.f32 %v850_v63, %v849_v55 }
 0x100   : > { %v838_v2 = vadd.f32 %v837_v60, %v836_v54 }
 0x101   : > { %v994_v1 = vadd.f32 %v993_v59, %v992_v39 }
 0x102   : > { %v839_v10 = vrot.slane %v838_v2, 1 }
 0x103   : > { %v995_v8 = vrot.slane %v994_v1, 2 }
 0x104   : > { %v840_v52 = vadd.f32 %v839_v10, %v838_v2 }
 0x105   : > { %v996_v15 = vadd.f32 %v995_v8, %v994_v1 }
 0x106   : > { %v1233_v19 = vpop.eup %1232 }
 0x107   : > { %v1235_v20 = vpop.eup %1234 }
 0x108   : > { %v975_v25 = vadd.f32 %v1235_v20, %v1233_v19  ;;  %v1237_v26 = vpop.eup %1236  ;;  %v997_v20 = vrot.slane %v996_v15, 1 }
 0x109   : > { %v1239_v29 = vpop.eup %1238 }
 0x10a   : > { %v976_v27 = vadd.f32 %v1237_v26, %v975_v25  ;;  %v1241_v12 = vpop.eup %1240  ;;  %v998_v24 = vadd.f32 %v997_v20, %v996_v15 }
 0x10b   : > { %v819_v16 = vmul.f32 0.6931472, %v1241_v12 }
 0x10c   : > { %v977_v37 = vadd.f32 %v1239_v29, %v976_v27 }
 0x10d   : > { %v841_v21 = vsub.f32 %v819_v16, %v840_v52 }
 0x10e   : > { %v978_v38 = vrot.slane %v977_v37, 4 }
 0x110   : > { %v979_v43 = vadd.f32 %v978_v38, %v977_v37 }
 0x112   : > { %v980_v45 = vrot.slane %v979_v43, 2 }
 0x114   : > { %v981_v50 = vadd.f32 %v980_v45, %v979_v43 }
 0x116   : > { %v982_v53 = vrot.slane %v981_v50, 1 }
 0x118   : > { %v983_v56 = vadd.f32 %v982_v53, %v981_v50  ;;  %v938_v57 = vpop.trf.xlu0 }
 0x119   : > { %v1000_v58 = vmul.f32 %v938_v57, %v1486_v28  ;;  %v625_v28 = vld [vmem:[%s517_s12] sm:$0x1] }
 0x11a   : > { %1242 = vlog2.f32 %v983_v56  ;;  %vm634_vm5 = vcmp.ne.s32.totalorder %v625_v28, 0 }
 0x11b   : > { %v1001_v62 = vrot.slane %v1000_v58, 4  ;;  %1244 = vlog2.f32 %v849_v55  ;;  %vm635_vm6 = vmand %vm633_vm4, %vm634_vm5 }
 0x11c   : > { %1246 = vrcp.f32 %v851_v4  ;;  %vm636_vm8 = vmand %vm635_vm6, %vm632_vm7 }
 0x11d   : > { %v1002_v0 = vadd.f32 %v1001_v62, %v1000_v58  ;;  %v855_v25 = vsel %vm636_vm8, %v841_v21, 0.0  ;;  %v1186_v32 = vsel %vm636_vm8, 1.0, %v1305_v31 }
 0x11e   : > { %v1021_v29 = vrot.slane %v855_v25, %v1493_v3 }
 0x11f   : > { %v1003_v61 = vrot.slane %v1002_v0, 2 }
 0x120   : > { %v1030_v37 = vsel %vm1029_vm9, %v1186_v32, %v1021_v29 }
 0x121   : > { %v1004_v6 = vadd.f32 %v1003_v61, %v1002_v0 }
 0x123   : > { %v1005_v11 = vrot.slane %v1004_v6, 1 }
 0x125   : > { %v1006_v13 = vadd.f32 %v1005_v11, %v1004_v6 }
 0x127   : > { %v1007_v17 = vadd.f32 0.05, %v1006_v13  ;;  %v1243_v18 = vpop.eup %1242 }
 0x128   : > { %v985_v23 = vmul.f32 0.6931472, %v1243_v18  ;;  %v1245_v5 = vpop.eup %1244 }
 0x129   : > { %v1008_v19 = vmul.f32 2.0, %v1007_v17  ;;  %1248 = vlog2.f32 %v1007_v17  ;;  %v1247_v27 = vpop.eup %1246  ;;  %v854_v30 = vmul.f32 0.6931472, %v1245_v5 }
 0x12a   : > { %v999_v26 = vsub.f32 %v985_v23, %v998_v24  ;;  %v856_v33 = vsel %vm632_vm7, %v1247_v27, 0.0 }
 0x12b   : > { %v1009_v22 = vmul.f32 %v1008_v19, %v1007_v17  ;;  %v857_v38 = vsel %vm632_vm7, %v854_v30, 0.0  ;;  %v1032_v36 = vsel %vm1031_vm10, %v1030_v37, %v856_v33 }
 0x12c   : > { %v1013_v34 = vsel %vm636_vm8, %v999_v26, 0.0  ;;  %v1034_v43 = vsel %vm1033_vm11, %v1032_v36, %v857_v38 }
 0x12d   : > { %1250 = vrcp.f32 %v1009_v22  ;;  %v1027_v40 = vrot.slane %v1013_v34, %v1493_v3 }
 0x12f   : > { %v1036_v45 = vsel %vm1035_vm12, %v1034_v43, %v1027_v40 }
 0x136   : > { %v1249_v35 = vpop.eup %1248 }
 0x137   : > { %v1012_v41 = vmul.f32 0.6931472, %v1249_v35 }
 0x139   : > { %v1015_v46 = vsel %vm632_vm7, %v1012_v41, 0.0 }
 0x13a   : > { %v1251_v42 = vpop.eup %1250 }
 0x13b   : > { %v1014_v44 = vsel %vm632_vm7, %v1251_v42, 0.0 }
 0x13c   : > { %v1038_v48 = vsel %vm1037_vm13, %v1036_v45, %v1014_v44 }
 0x13d   : > { %v1040_v3 = vsel %vm1039_vm14, %v1038_v48, %v1015_v46 }
 0x13e   : > { %v1042_v49 = vsel %vm1041_vm15, %v1040_v3, 0.0 }
 0x13f   : > { %v1043_v50 = vadd.f32 %v1042_v49, %v1016_v47 }
 0x141   : > { %1044 = vst [vmem:[#allocation2] sm:$0xff] %v1043_v50 }
 0x142   : > { %1265 = shalt.err (!%p1262_p0)
}
 0x143   : > { %1192 = dma.vmem_to_hbm [thread:$0]  (%p1532_p7), %s1055_s29, 128, %s1563_s7, [#allocation3]  }
 0x144   : > { %1289 = dma.done.wait (%p1532_p7), [#allocation3], 128  }
 0x145   : > { %1291 = vsyncadd (%p1532_p7), [#allocation3], 4294967168 }
 0x146 PF: > { %s18_s26 = sadd.s32 1, %s1302_s26   ;;  %s1565_s24 = smov %s1298_s25 }
 0x147   : > { %p15_p1 = scmp.ge.s32.totalorder %s18_s26, 5   ;;  %s1566_s25 = smov %s1568_s28 }
 0x149   :  { %17 = sbr.rel (!%p15_p1) target bundleno = 2 (0x2), region = 98 }
 0x14e   :  { %1067 = vsyncpa [#allocation3], 1 }
 0x14f   :  { %1069 = vsyncpa [#allocation3 + $0x1], 1 }

</bundles_post_ra>
